<compile_context>
chip_gen: v7x
topology: tpu7x:2x2x1
jax: 0.10.0
libtpu: 0.0.40
codegen_flags: <defaults>
</compile_context>

<pallas_src>
import functools

import numpy as np
import jax
import jax.numpy as jnp
from jax.experimental import pallas as pl
from jax.experimental.pallas import tpu as pltpu


def _round_up(n, m):
    return ((n + m - 1) // m) * m


@functools.lru_cache(maxsize=None)
def _tpu_has_bf16_eup():
    """bf16 transcendentals are fast on v6e/v7x; v5e and older lack a bf16 EUP/VPU."""
    try:
        kind = jax.devices()[0].device_kind.lower()
    except Exception:
        return False
    return not any(tag in kind for tag in ("v2", "v3", "v4", "v5"))


def _critic_kernel(x_ref, w1_ref, b1_ref, w2_ref, b2_ref, w3_ref, b3_ref, o_ref,
                   *, n_chunks, chunk_rows, compute_dtype, tanh_dtype):
    # Grid-invariant operands: hoisted out of the chunk loop (loaded once per grid step).
    w1 = w1_ref[...]          # (input_dim, H)   compute_dtype
    w2 = w2_ref[...]          # (H, H)           compute_dtype
    w3 = w3_ref[...]          # (1, H)           compute_dtype
    b1 = b1_ref[...]          # (1, H)           f32
    b2 = b2_ref[...]          # (1, H)           f32
    b3 = b3_ref[0]            # scalar, SMEM     f32

    # Independent row sub-chunks: the MXU pass of chunk c+1 can overlap the tanh (EUP)
    # and value-head work of chunk c.
    for c in range(n_chunks):
        r0 = c * chunk_rows
        xs = x_ref[pl.ds(r0, chunk_rows), :].astype(compute_dtype)        # VPU cast
        a1 = jnp.dot(xs, w1, preferred_element_type=jnp.float32) + b1     # MXU, f32 acc
        h1 = jnp.tanh(a1.astype(tanh_dtype))                              # EUP
        a2 = jnp.dot(h1.astype(compute_dtype), w2,
                     preferred_element_type=jnp.float32) + b2             # MXU, f32 acc
        h2 = jnp.tanh(a2.astype(tanh_dtype))                              # EUP
        # N=1 value head as (1,H) x (chunk,H)^T -> (1, chunk): one short MXU pass whose
        # result is already lane-major, so the store below is a dense lane-row store.
        v = jax.lax.dot_general(
            w3, h2.astype(compute_dtype),
            dimension_numbers=(((1,), (1,)), ((), ())),
            preferred_element_type=jnp.float32)
        o_ref[:, pl.ds(r0, chunk_rows)] = (v + b3).astype(o_ref.dtype)


@functools.partial(
    jax.jit, static_argnames=("tm", "chunk_rows", "compute_dtype", "tanh_dtype"))
def _critic_forward(x, w1, b1, w2, b2, w3, b3, *, tm, chunk_rows, compute_dtype, tanh_dtype):
    B, input_dim = x.shape
    hidden = w1.shape[1]
    num_tiles = pl.cdiv(B, tm)
    Bp = num_tiles * tm
    n_chunks = tm // chunk_rows

    # One-time casts of the tiny parameter tensors (<~80 KB total); x stays in HBM untouched
    # and is cast in-kernel (no extra full pass over x outside the pipeline).
    w1c = w1.astype(compute_dtype)
    w2c = w2.astype(compute_dtype)
    w3r = w3.reshape(1, hidden).astype(compute_dtype)
    b1r = b1.reshape(1, hidden).astype(jnp.float32)
    b2r = b2.reshape(1, hidden).astype(jnp.float32)
    b3s = b3.reshape(1).astype(jnp.float32)

    kernel = functools.partial(
        _critic_kernel, n_chunks=n_chunks, chunk_rows=chunk_rows,
        compute_dtype=compute_dtype, tanh_dtype=tanh_dtype)

    rep = lambda shape: pl.BlockSpec(shape, lambda i: (0, 0))   # grid-invariant params
    op_bytes = np.dtype(compute_dtype).itemsize
    cost = pl.CostEstimate(
        flops=2 * Bp * (input_dim * hidden + hidden * hidden + hidden),
        transcendentals=2 * Bp * hidden,
        bytes_accessed=(B * input_dim * x.dtype.itemsize
                        + (input_dim * hidden + hidden * hidden + hidden) * op_bytes
                        + (2 * hidden + 1) * 4
                        + Bp * 4))

    out = pl.pallas_call(
        kernel,
        out_shape=jax.ShapeDtypeStruct((1, Bp), jnp.float32),
        grid_spec=pltpu.PrefetchScalarGridSpec(
            num_scalar_prefetch=0,
            grid=(num_tiles,),
            in_specs=[
                pl.BlockSpec((tm, input_dim), lambda i: (i, 0)),    # x batch tile (ragged last)
                rep((input_dim, hidden)),                           # w1 (DMA'd once)
                rep((1, hidden)),                                   # b1
                rep((hidden, hidden)),                              # w2
                rep((1, hidden)),                                   # b2
                rep((1, hidden)),                                   # w3 as a lane row
                pl.BlockSpec(memory_space=pltpu.MemorySpace.SMEM),  # b3 scalar
            ],
            out_specs=pl.BlockSpec((1, tm), lambda i: (0, i)),      # lane-dense output slab
        ),
        compiler_params=pltpu.CompilerParams(
            dimension_semantics=("parallel",)),   # batch tiles shard across TCs on v7x
        cost_estimate=cost,
    )(x, w1c, b1r, w2c, b2r, w3r, b3s)

    # Slice the (1, Bp) slab back to (B, 1); this touches only ~4*B bytes.
    return out[0, :B].reshape(B, 1)


def critic_forward(x, w1, b1, w2, b2, w3, b3, *, block_b=1024,
                   compute_dtype=jnp.bfloat16, tanh_dtype=None):
    """Fused 3-layer critic MLP.  x: (B, input_dim) -> (B, 1) float32.

    block_b: max batch-tile rows per grid step (large tiles amortize per-step overhead).
    compute_dtype: matmul operand dtype (accumulation is always f32).
    tanh_dtype: dtype for the tanh; default = bf16 on chips with a bf16 EUP, else f32.
    """
    B = x.shape[0]
    block_b = max(256, _round_up(block_b, 256))
    if B <= 256:
        tm = max(8, _round_up(B, 8))                       # single grid step
    else:
        # >= 2 batch tiles so a 2-TensorCore chip (v7x) can split the parallel grid axis.
        tm = min(block_b, _round_up(-(-B // 2), 256))
    # Independent 128/256-row sub-chunks per tile to overlap MXU and EUP.
    if tm >= 512:
        chunk_rows = 256
    elif tm >= 256:
        chunk_rows = 128
    else:
        chunk_rows = tm
    if tm % chunk_rows != 0:
        chunk_rows = tm
    if tanh_dtype is None:
        tanh_dtype = (jnp.bfloat16
                      if (compute_dtype == jnp.bfloat16 and _tpu_has_bf16_eup())
                      else jnp.float32)
    return _critic_forward(x, w1, b1, w2, b2, w3, b3, tm=tm, chunk_rows=chunk_rows,
                           compute_dtype=compute_dtype, tanh_dtype=tanh_dtype)


def init_critic_params(key, input_dim=14, inner_layer=128):
    """Deterministic synthetic parameters (shapes match the PyTorch module)."""
    k1, k2, k3, k4, k5, k6 = jax.random.split(key, 6)
    w1 = jax.random.normal(k1, (input_dim, inner_layer), jnp.float32) * 0.1
    b1 = jax.random.normal(k2, (1, inner_layer), jnp.float32) * 0.1
    w2 = jax.random.normal(k3, (inner_layer, inner_layer), jnp.float32) * 0.1
    b2 = jax.random.normal(k4, (1, inner_layer), jnp.float32) * 0.1
    w3 = jax.random.normal(k5, (inner_layer, 1), jnp.float32) * 0.1
    b3 = jax.random.normal(k6, (1, 1), jnp.float32) * 0.1
    return w1, b1, w2, b2, w3, b3


def critic_reference(x, w1, b1, w2, b2, w3, b3):
    hp = jax.lax.Precision.HIGHEST
    h1 = jnp.tanh(jnp.dot(x, w1, precision=hp) + b1)
    h2 = jnp.tanh(jnp.dot(h1, w2, precision=hp) + b2)
    return jnp.dot(h2, w3, precision=hp) + b3


# TODO(synk): compress_state / compress_states / compress_agent are host-side numpy
# trajectory utilities, not part of the forward pass; not translated to Pallas.

if __name__ == "__main__":
    key = jax.random.PRNGKey(0)
    kx, kp = jax.random.split(key)

    input_dim, inner_layer = 14, 128
    params = init_critic_params(kp, input_dim=input_dim, inner_layer=inner_layer)

    # Case 1: small batch, f32 matmul path (single grid step, single chunk).
    x16 = jax.random.normal(kx, (16, input_dim), jnp.float32)
    ref16 = critic_reference(x16, *params)
    out_f32 = jax.block_until_ready(
        critic_forward(x16, *params, compute_dtype=jnp.float32))
    assert out_f32.shape == (16, 1)
    assert jnp.max(jnp.abs(out_f32 - ref16)) < 2e-3

    # Case 2: default bf16 matmul path (f32 accumulation).
    out_bf16 = jax.block_until_ready(critic_forward(x16, *params))
    assert out_bf16.shape == (16, 1)
    assert jnp.max(jnp.abs(out_bf16 - ref16)) < 1e-1

    # Case 3: ragged small batch (B not a multiple of 8) — exercises Pallas' padded block.
    x37 = jax.random.normal(jax.random.fold_in(kx, 1), (37, input_dim), jnp.float32)
    out37 = jax.block_until_ready(
        critic_forward(x37, *params, compute_dtype=jnp.float32))
    assert out37.shape == (37, 1)
    assert jnp.max(jnp.abs(out37 - critic_reference(x37, *params))) < 2e-3

    # Case 4: multi-tile grid with a ragged last tile and the sub-chunked kernel body.
    x300 = jax.random.normal(jax.random.fold_in(kx, 2), (300, input_dim), jnp.float32)
    out300 = jax.block_until_ready(critic_forward(x300, *params))
    assert out300.shape == (300, 1)
    assert jnp.max(jnp.abs(out300 - critic_reference(x300, *params))) < 1e-1

    print("KERNEL_OK")
</pallas_src>

<mosaic_0001>
module attributes {stable_mosaic.version = 11 : i64} {
  func.func @_critic_kernel(%arg0: i32, %arg1: memref<16x14xf32, #tpu.memory_space<vmem>>, %arg2: memref<14x128xf32, #tpu.memory_space<vmem>>, %arg3: memref<1x128xf32, #tpu.memory_space<vmem>>, %arg4: memref<128x128xf32, #tpu.memory_space<vmem>>, %arg5: memref<1x128xf32, #tpu.memory_space<vmem>>, %arg6: memref<1x128xf32, #tpu.memory_space<vmem>>, %arg7: memref<1xf32, #tpu.memory_space<smem>>, %arg8: memref<1x16xf32, #tpu.memory_space<vmem>>) attributes {dimension_semantics = [#tpu.dimension_semantics<parallel>], iteration_bounds = array<i64: 1>, scalar_prefetch = 0 : i64, scratch_operands = 0 : i64, tpu.core_type = #tpu.core_type<tc>, window_params = [{transform_indices = @transform_0, window_bounds = array<i64: 16, 14>}, {pipeline_mode = #tpu.pipeline_mode<synchronous>, transform_indices = @transform_1, window_bounds = array<i64: 14, 128>}, {pipeline_mode = #tpu.pipeline_mode<synchronous>, transform_indices = @transform_2, window_bounds = array<i64: 1, 128>}, {pipeline_mode = #tpu.pipeline_mode<synchronous>, transform_indices = @transform_3, window_bounds = array<i64: 128, 128>}, {pipeline_mode = #tpu.pipeline_mode<synchronous>, transform_indices = @transform_4, window_bounds = array<i64: 1, 128>}, {pipeline_mode = #tpu.pipeline_mode<synchronous>, transform_indices = @transform_5, window_bounds = array<i64: 1, 128>}, {transform_indices = @transform_6, window_bounds = array<i64: 1>}, {transform_indices = @transform_7, window_bounds = array<i64: 1, 16>}]} {
    %c0 = arith.constant 0 : index
    %c0_0 = arith.constant 0 : index
    %0 = vector.load %arg2[%c0, %c0_0] : memref<14x128xf32, #tpu.memory_space<vmem>>, vector<14x128xf32>
    %c0_1 = arith.constant 0 : index
    %c0_2 = arith.constant 0 : index
    %1 = vector.load %arg4[%c0_1, %c0_2] : memref<128x128xf32, #tpu.memory_space<vmem>>, vector<128x128xf32>
    %c0_3 = arith.constant 0 : index
    %c0_4 = arith.constant 0 : index
    %2 = vector.load %arg6[%c0_3, %c0_4] : memref<1x128xf32, #tpu.memory_space<vmem>>, vector<1x128xf32>
    %c0_5 = arith.constant 0 : index
    %c0_6 = arith.constant 0 : index
    %3 = vector.load %arg3[%c0_5, %c0_6] : memref<1x128xf32, #tpu.memory_space<vmem>>, vector<1x128xf32>
    %c0_7 = arith.constant 0 : index
    %c0_8 = arith.constant 0 : index
    %4 = vector.load %arg5[%c0_7, %c0_8] : memref<1x128xf32, #tpu.memory_space<vmem>>, vector<1x128xf32>
    %c0_9 = arith.constant 0 : index
    %5 = memref.load %arg7[%c0_9] : memref<1xf32, #tpu.memory_space<smem>>
    %c0_10 = arith.constant 0 : index
    %c0_11 = arith.constant 0 : index
    %6 = vector.load %arg1[%c0_10, %c0_11] : memref<16x14xf32, #tpu.memory_space<vmem>>, vector<16x14xf32>
    %cst = arith.constant dense<0.000000e+00> : vector<16x128xf32>
    %7 = tpu.matmul %6, %0, %cst {dimension_numbers = #tpu.dot_dimension_numbers<[1], [0], [0], [1], [0, 0, 1, 1], [], []>} : vector<16x14xf32>, vector<14x128xf32>, vector<16x128xf32> -> vector<16x128xf32>
    %8 = vector.broadcast %3 : vector<1x128xf32> to vector<16x128xf32>
    %9 = arith.addf %7, %8 : vector<16x128xf32>
    %10 = math.tanh %9 : vector<16x128xf32>
    %cst_12 = arith.constant dense<0.000000e+00> : vector<16x128xf32>
    %11 = tpu.matmul %10, %1, %cst_12 {dimension_numbers = #tpu.dot_dimension_numbers<[1], [0], [0], [1], [0, 0, 1, 1], [], []>} : vector<16x128xf32>, vector<128x128xf32>, vector<16x128xf32> -> vector<16x128xf32>
    %12 = vector.broadcast %4 : vector<1x128xf32> to vector<16x128xf32>
    %13 = arith.addf %11, %12 : vector<16x128xf32>
    %14 = math.tanh %13 : vector<16x128xf32>
    %cst_13 = arith.constant dense<0.000000e+00> : vector<1x16xf32>
    %15 = tpu.matmul %2, %14, %cst_13 {dimension_numbers = #tpu.dot_dimension_numbers<[1], [1], [0], [0], [0, 0, 1, 0], [], []>} : vector<1x128xf32>, vector<16x128xf32>, vector<1x16xf32> -> vector<1x16xf32>
    %16 = vector.broadcast %5 : f32 to vector<1x16xf32>
    %17 = arith.addf %15, %16 : vector<1x16xf32>
    %c0_14 = arith.constant 0 : index
    %c0_15 = arith.constant 0 : index
    %18 = vector.load %arg8[%c0_14, %c0_15] : memref<1x16xf32, #tpu.memory_space<vmem>>, vector<1x16xf32>
    tpu.vector_store %arg8[%c0_14, %c0_15], %17 {strides = array<i32>} : memref<1x16xf32, #tpu.memory_space<vmem>>, vector<1x16xf32>,
    return
  }
  func.func @transform_0(%arg0: i32) -> (i32, i32) {
    %c0_i32 = arith.constant 0 : i32
    %c0_i32_0 = arith.constant 0 : i32
    return %arg0, %c0_i32 : i32, i32
  }
  func.func @transform_1(%arg0: i32) -> (i32, i32) {
    %c0_i32 = arith.constant 0 : i32
    %c0_i32_0 = arith.constant 0 : i32
    %c0_i32_1 = arith.constant 0 : i32
    return %c0_i32, %c0_i32_0 : i32, i32
  }
  func.func @transform_2(%arg0: i32) -> (i32, i32) {
    %c0_i32 = arith.constant 0 : i32
    %c0_i32_0 = arith.constant 0 : i32
    %c0_i32_1 = arith.constant 0 : i32
    return %c0_i32, %c0_i32_0 : i32, i32
  }
  func.func @transform_3(%arg0: i32) -> (i32, i32) {
    %c0_i32 = arith.constant 0 : i32
    %c0_i32_0 = arith.constant 0 : i32
    %c0_i32_1 = arith.constant 0 : i32
    return %c0_i32, %c0_i32_0 : i32, i32
  }
  func.func @transform_4(%arg0: i32) -> (i32, i32) {
    %c0_i32 = arith.constant 0 : i32
    %c0_i32_0 = arith.constant 0 : i32
    %c0_i32_1 = arith.constant 0 : i32
    return %c0_i32, %c0_i32_0 : i32, i32
  }
  func.func @transform_5(%arg0: i32) -> (i32, i32) {
    %c0_i32 = arith.constant 0 : i32
    %c0_i32_0 = arith.constant 0 : i32
    %c0_i32_1 = arith.constant 0 : i32
    return %c0_i32, %c0_i32_0 : i32, i32
  }
  func.func @transform_6(%arg0: i32) -> i32 {
    %c0_i32 = arith.constant 0 : i32
    %c0_i32_0 = arith.constant 0 : i32
    return %c0_i32 : i32
  }
  func.func @transform_7(%arg0: i32) -> (i32, i32) {
    %c0_i32 = arith.constant 0 : i32
    %c0_i32_0 = arith.constant 0 : i32
    return %c0_i32, %arg0 : i32, i32
  }
}

</mosaic_0001>

<bundles_post_ra>
// kernel: _critic_forward.1
= control target key start
LH: loop header
LB: loop body
LE: loop exit
PB: predicated region body
PF: predicated region fallthrough
CT: control target
= control target key end

     0   :  { %13 = vsyncpa [#allocation4], 0  ;;  %s719_s0 = inlined_call_operand.hbm [shape: f32[16,14], index: 0, kind: input, shape index: {}]   ;;  %s720_s1 = inlined_call_operand.hbm [shape: f32[14,128], index: 1, kind: input, shape index: {}]   ;;  %s721_s2 = inlined_call_operand.vmem [shape: f32[1,128], index: 2, kind: input, shape index: {}]   ;;  %s722_s3 = inlined_call_operand.hbm [shape: f32[128,128], index: 3, kind: input, shape index: {}]   ;;  %s723_s4 = inlined_call_operand.vmem [shape: f32[1,128], index: 4, kind: input, shape index: {}]   ;;  %s724_s5 = inlined_call_operand.vmem [shape: f32[1,128], index: 5, kind: input, shape index: {}]   ;;  %s725_s6 = inlined_call_operand.<no memory space> [shape: f32[1], index: 6, kind: input, shape index: {}]   ;;  %s726_s7 = inlined_call_operand.hbm [shape: f32[1,16], index: 7, kind: output, shape index: {}]  }
   0x1   :  { %14 = vsyncpa [#allocation7], 0 }
   0x2   :  { %15 = vsyncpa [#allocation5], 0  ;;  %s591_s24 = smov [#allocation6]   ;;  %s592_s26 = smov [#allocation3]  }
   0x3   :  { %s33_s25 = sshll.u32 %s591_s24, 4  ;;  %s21_s27 = sshll.u32 %s592_s26, 4  ;;  %s34_s25 = int_to_ptr.vmem [resolvable:$true] %s33_s25  ;;  %s641_s27 = int_to_ptr.vmem [resolvable:$true] %s21_s27 }
   0x4   :  { %s497_s30 = scalar_lea.hbm %s720_s1, 256 }
   0x5   :  { %p498_p0 = scmp.ne.s32.totalorder %s720_s1, %s497_s30  ;;  %p501_p1 = scmp.lt.u32.totalorder %s497_s30, %s720_s1 }
   0x7   :  { %p503_p2 = pnand %p501_p1, %p498_p0 }
   0x9   :  { %506 = shalt.err (!%p503_p2)
}
   0xa   :  { %s507_s12 = scalar_lea.vmem %s34_s25, 256  ;;  %p512_p4 = scmp.lt.s32.totalorder %s34_s25, %s34_s25 }
   0xb   :  { %p508_p3 = scmp.ne.s32.totalorder %s34_s25, %s507_s12  ;;  %p513_p5 = scmp.lt.s32.totalorder %s507_s12, %s507_s12 }
   0xd   :  { %p514_p6 = por %p513_p5, %p512_p4 }
   0xf   :  { %p515_p7 = pnand %p514_p6, %p508_p3 }
  0x11   :  { %518 = shalt.err (!%p515_p7)
}
  0x12   :  { %s593_s13 = smov 128   ;;  %s594_s14 = smov 8  }
  0x13   :  { %39 = dma.hbm_to_vmem [thread:$0]  %s720_s1, 256, %s34_s25, [#allocation7], %s593_s13, %s593_s13, %s594_s14  }
  0x14   :  { %s519_s19 = scalar_lea.hbm %s719_s0, 256 }
  0x15   :  { %p520_p8 = scmp.ne.s32.totalorder %s719_s0, %s519_s19  ;;  %p523_p9 = scmp.lt.u32.totalorder %s519_s19, %s719_s0 }
  0x17   :  { %p525_p10 = pnand %p523_p9, %p520_p8 }
  0x19   :  { %528 = shalt.err (!%p525_p10)
}
  0x1a   :  { %s529_s24 = scalar_lea.vmem %s641_s27, 256  ;;  %p534_p12 = scmp.lt.s32.totalorder %s641_s27, %s641_s27 }
  0x1b   :  { %p530_p11 = scmp.ne.s32.totalorder %s641_s27, %s529_s24  ;;  %p535_p13 = scmp.lt.s32.totalorder %s529_s24, %s529_s24 }
  0x1d   :  { %p536_p0 = por %p535_p13, %p534_p12 }
  0x1f   :  { %p537_p1 = pnand %p536_p0, %p530_p11 }
  0x21   :  { %540 = shalt.err (!%p537_p1)
}
  0x22   :  { %27 = dma.hbm_to_vmem [thread:$0]  %s719_s0, 256, %s641_s27, [#allocation4], %s593_s13, %s593_s13, %s594_s14  }
  0x23   :  { %s595_s26 = smov [#allocation8]   ;;  %s541_s8 = scalar_lea.hbm %s722_s3, 2048 }
  0x24   :  { %s47_s28 = sshll.u32 %s595_s26, 4  ;;  %p542_p2 = scmp.ne.s32.totalorder %s722_s3, %s541_s8  ;;  %s48_s28 = int_to_ptr.vmem [resolvable:$true] %s47_s28 }
  0x25   :  { %p545_p3 = scmp.lt.u32.totalorder %s541_s8, %s722_s3 }
  0x27   :  { %p547_p4 = pnand %p545_p3, %p542_p2 }
  0x29   :  { %550 = shalt.err (!%p547_p4)
}
  0x2a   :  { %s551_s15 = scalar_lea.vmem %s48_s28, 2048  ;;  %p556_p6 = scmp.lt.s32.totalorder %s48_s28, %s48_s28 }
  0x2b   :  { %p552_p5 = scmp.ne.s32.totalorder %s48_s28, %s551_s15  ;;  %p557_p7 = scmp.lt.s32.totalorder %s551_s15, %s551_s15 }
  0x2d   :  { %p558_p8 = por %p557_p7, %p556_p6 }
  0x2f   :  { %p559_p9 = pnand %p558_p8, %p552_p5 }
  0x31   :  { %562 = shalt.err (!%p559_p9)
}
  0x32   :  { %53 = dma.hbm_to_vmem [thread:$0]  %s722_s3, 2048, %s48_s28, [#allocation7], %s593_s13, %s593_s13, %s594_s14  }
  0x33   :  { %585 = dma.done.wait [#allocation4], 256  }
  0x34   :  { %586 = vsyncadd [#allocation4], 4294967040 }
  0x35   :  { %587 = dma.done.wait [#allocation7], 2304  }
  0x36   :  { %588 = vsyncadd [#allocation7], 4294964992  ;;  %vm106_vm0 = vcmask 1045504   ;;  %vm99_vm1 = vcmask 113664   ;;  %vm596_vm2 = vmmov 1   ;;  %v69_v0 = vld [vmem:[#allocation6] sm:$0xff]  ;;  %v270_v47 = vstv %s725_s6 }
  0x37   :  { %vm439_vm3 = vmpackc.low %vm106_vm0, %vm596_vm2  ;;  %v70_v1 = vld [vmem:[#allocation6 + $0x8] sm:$0x3f]  ;;  %v91_v2 = vld [vmem:[#allocation3] sm:$0xff]  ;;  %v597_v36 = vmov 0.0|0.0   ;;  %vm598_vm4 = vmmov 0   ;;  %v599_v37 = vmov 0.0  }
  0x38   :  { %v438_v3 = vpack.c.bf16 %v70_v1, %v69_v0  ;;  %393 = vmatprep.mubr.msk.f32.mxu0 %vm99_vm1, %v91_v2  ;;  %v71_v4 = vld [vmem:[#allocation8] sm:$0xff]  ;;  %v72_v5 = vld [vmem:[#allocation8 + $0x8] sm:$0xff]  ;;  %v73_v7 = vld [vmem:[#allocation8 + $0x10] sm:$0xff]  ;;  %vm341_vm5 = vcmask 122880  }
  0x39   :  { %v444_v6 = vpack.c.bf16 %v72_v5, %v71_v4  ;;  %v74_v8 = vld [vmem:[#allocation8 + $0x18] sm:$0xff]  ;;  %v75_v10 = vld [vmem:[#allocation8 + $0x20] sm:$0xff]  ;;  %v76_v11 = vld [vmem:[#allocation8 + $0x28] sm:$0xff] }
  0x3a   :  { %440 = vmatprep.subr.msk.bf16.mxu0 %vm439_vm3, %v438_v3  ;;  %v448_v9 = vpack.c.bf16 %v74_v8, %v73_v7  ;;  %v92_v12 = vld [vmem:[#allocation3 + $0x8] sm:$0xff]  ;;  %v452_v13 = vpack.c.bf16 %v76_v11, %v75_v10  ;;  %v77_v14 = vld [vmem:[#allocation8 + $0x30] sm:$0xff]  ;;  %v78_v15 = vld [vmem:[#allocation8 + $0x38] sm:$0xff] }
  0x3b   :  { %443 = vmatpush3.bf16.msk.msra.mxu0 %vm439_vm3, %v438_v3  ;;  %445 = vmatprep.subr.bf16.mxu1 %v444_v6  ;;  %v456_v16 = vpack.c.bf16 %v78_v15, %v77_v14  ;;  %v79_v17 = vld [vmem:[#allocation8 + $0x40] sm:$0xff]  ;;  %v80_v18 = vld [vmem:[#allocation8 + $0x48] sm:$0xff]  ;;  %v81_v20 = vld [vmem:[#allocation8 + $0x50] sm:$0xff] }
  0x3c   :  { %447 = vmatpush3.bf16.msra.mxu1 %v444_v6  ;;  %v460_v19 = vpack.c.bf16 %v80_v18, %v79_v17  ;;  %v82_v21 = vld [vmem:[#allocation8 + $0x58] sm:$0xff]  ;;  %v83_v23 = vld [vmem:[#allocation8 + $0x60] sm:$0xff]  ;;  %v84_v24 = vld [vmem:[#allocation8 + $0x68] sm:$0xff]  ;;  %476 = vmatprep.subr.bf16.mxu0 %v597_v36 }
  0x3d   :  { %449 = vmatprep.subr.bf16.mxu1 %v448_v9  ;;  %v464_v22 = vpack.c.bf16 %v82_v21, %v81_v20  ;;  %v85_v25 = vld [vmem:[#allocation8 + $0x70] sm:$0xff]  ;;  %v468_v26 = vpack.c.bf16 %v84_v24, %v83_v23  ;;  %v86_v27 = vld [vmem:[#allocation8 + $0x78] sm:$0xff]  ;;  %v359_v29 = vld [vmem:[%s721_s2] ss:$0 sm:$0xff] }
  0x3e   :  { %394 = vmatmul.mubr.msk.f32.vlgmr.msra.gmra.mrb[0].mxu0 %vm99_vm1, %v92_v12  ;;  %v472_v28 = vpack.c.bf16 %v86_v27, %v85_v25  ;;  %v363_v38 = vld [vmem:[%s723_s4] ss:$0 sm:$0xff]  ;;  %s600_s4 = smov [#allocation9]  }
  0x3f   :  { %435 = vmatprep.mubr.msk.f32.mxu0 %vm598_vm4, %v599_v37  ;;  %v87_v46 = vld [vmem:[%s724_s5] sm:$0x1]  ;;  %s349_s20 = sshll.u32 %s600_s4, 4  ;;  %s350_s20 = int_to_ptr.vmem [resolvable:$true] %s349_s20 }
  0x40   :  { %451 = vmatpush3.bf16.msra.mxu1 %v448_v9  ;;  %s563_s21 = scalar_lea.vmem %s350_s20, 16  ;;  %s567_s22 = scalar_lea.vmem %s350_s20, 32 }
  0x41   :  { %453 = vmatprep.subr.bf16.mxu1 %v452_v13  ;;  %p564_p10 = scmp.ne.s32.totalorder %s350_s20, %s563_s21  ;;  %p568_p11 = scmp.lt.s32.totalorder %s350_s20, %s350_s20 }
  0x42   :  { %p569_p12 = scmp.lt.s32.totalorder %s567_s22, %s563_s21 }
  0x44   :  { %455 = vmatpush3.bf16.msra.mxu1 %v452_v13  ;;  %p570_p13 = por %p569_p12, %p568_p11 }
  0x45   :  { %457 = vmatprep.subr.bf16.mxu1 %v456_v16 }
  0x46   :  { %p571_p0 = pnand %p570_p13, %p564_p10 }
  0x48   :  { %459 = vmatpush3.bf16.msra.mxu1 %v456_v16 }
  0x49   :  { %461 = vmatprep.subr.bf16.mxu1 %v460_v19 }
  0x4c   :  { %463 = vmatpush3.bf16.msra.mxu1 %v460_v19 }
  0x4d   :  { %465 = vmatprep.subr.bf16.mxu1 %v464_v22 }
  0x50   :  { %467 = vmatpush3.bf16.msra.mxu1 %v464_v22 }
  0x51   :  { %469 = vmatprep.subr.bf16.mxu1 %v468_v26 }
  0x54   :  { %471 = vmatpush3.bf16.msra.mxu1 %v468_v26 }
  0x55   :  { %473 = vmatprep.subr.bf16.mxu1 %v472_v28 }
  0x58   :  { %475 = vmatpush3.bf16.msra.mxu1 %v472_v28 }
 0x111   :  { %v395_v30 = vpop.f32.mrb[0].mxu0 }
 0x112   :  { %v182_v31 = vadd.f32 %v395_v30, %v359_v29  ;;  %v176_v32 = vpop.f32.mrb[1].mxu0 }
 0x113   :  { %v177_v33 = vadd.f32 %v359_v29, %v176_v32 }
 0x115   :  { %489 = vtanh.f32 %v177_v33 }
 0x116   :  { %491 = vtanh.f32 %v182_v31 }
 0x11f   :  { %v490_v34 = vpop.eup %489 }
 0x120   :  { %v492_v35 = vpop.eup %491  ;;  %428 = vmatprep.mubr.f32.mxu1 %v490_v34 }
 0x121   :  { %429 = vmatmul.mubr.f32.vlgmr.msra.gmra.mrb[0].mxu1 %v492_v35 }
 0x1f4   :  { %v430_v39 = vpop.f32.mrb[0].mxu1 }
 0x1f5   :  { %v265_v40 = vadd.f32 %v430_v39, %v363_v38  ;;  %v259_v41 = vpop.f32.mrb[1].mxu1 }
 0x1f6   :  { %v260_v42 = vadd.f32 %v363_v38, %v259_v41 }
 0x1f7   :  { %493 = vtanh.f32 %v265_v40 }
 0x1f8   :  { %495 = vtanh.f32 %v260_v42 }
 0x201   :  { %v494_v43 = vpop.eup %493 }
 0x202   :  { %v496_v44 = vpop.eup %495 }
 0x203   :  { %v477_v45 = vpack.c.bf16 %v494_v43, %v496_v44 }
 0x205   :  { %478 = vmatpush3.bf16.xpose.msra.mxu0 %v477_v45 }
 0x20c   :  { %436 = vmatmul.mubr.f32.vlgmr.msra.gmra.mrb[2].mxu0 %v87_v46 }
 0x2df   :  { %v337_v48 = vpop.f32.mrb[2].mxu0 }
 0x2e0   :  { %v338_v49 = vadd.f32 %v337_v48, %v270_v47  ;;  %v437_v50 = vpop.f32.mrb[3].mxu0 }
 0x2e2   :  { %342 = vst.msk [vmem:[#allocation9] sm:$0x1] %vm341_vm5, %v338_v49 }
 0x2e3   :  { %574 = shalt.err (!%p571_p0)
}
 0x2e4   :  { %s575_s6 = scalar_lea.hbm %s726_s7, 16 }
 0x2e5   :  { %p576_p1 = scmp.ne.s32.totalorder %s726_s7, %s575_s6  ;;  %p579_p2 = scmp.lt.u32.totalorder %s575_s6, %s726_s7 }
 0x2e7   :  { %p581_p3 = pnand %p579_p2, %p576_p1 }
 0x2e9   :  { %584 = shalt.err (!%p581_p3)
}
 0x2ea   :  { %352 = dma.vmem_to_hbm [thread:$0]  %s350_s20, 16, %s726_s7, [#allocation5]  }
 0x2eb   :  { %589 = dma.done.wait [#allocation5], 16  }
 0x2ec   :  { %590 = vsyncadd [#allocation5], 4294967280 }
 0x2ed   :  { %356 = vsyncpa [#allocation4], 1 }
 0x2ee   :  { %357 = vsyncpa [#allocation7], 1 }
 0x2ef   :  { %358 = vsyncpa [#allocation5], 1 }

</bundles_post_ra>
